<compile_context>
chip_gen: v6e
topology: v6e:2x2x1
jax: 0.10.0
libtpu: 0.0.40
codegen_flags: <defaults>
</compile_context>

<pallas_src>
import functools

import jax
import jax.numpy as jnp
from jax.experimental import pallas as pl
from jax.experimental.pallas import tpu as pltpu

IN_FEATURES = 784
HIDDEN = 128
OUT_FEATURES = 10
ACTIVATION_SCALE = 1.0     # default activation_scale of FCNetCustomQuant
DEFAULT_TILE_B = 2048      # HBM-bound: big row tiles amortize per-step pipeline overhead


def _round_up(x, m):
    return ((x + m - 1) // m) * m


def _choose_tile(batch, tile_b, align):
    """Adaptive batch tiling.

    Pick the number of tiles first (>=2 when the batch allows, preferring an even count so
    both v7x TensorCores stay busy), then size the tile to cover the batch with at most
    `align-1` rows of padding instead of up to `tile_b-1`.
    """
    n = pl.cdiv(batch, max(tile_b, align))
    if batch >= 2 * align:
        n = max(n, 2)
    if n > 1 and n % 2:
        n += 1
    tb = _round_up(pl.cdiv(batch, n), align)
    b_pad = _round_up(batch, tb)
    return tb, b_pad


def _fcnet_kernel(scale_ref, x_ref, w1_ref, b1_ref, w2_ref, b2_ref, o_ref, *, compute_dtype):
    cd = jnp.dtype(compute_dtype)
    prec = (jax.lax.Precision.HIGHEST if cd == jnp.dtype(jnp.float32)
            else jax.lax.Precision.DEFAULT)
    s = scale_ref[0]                                   # activation scale (SMEM scalar)

    # fc1: (TB, 784) @ (784, 128), f32 accumulation on the MXU
    h = jnp.dot(x_ref[...].astype(cd), w1_ref[...],
                preferred_element_type=jnp.float32, precision=prec)
    h = jnp.maximum(h + b1_ref[...], 0.0)              # bias + ReLU

    # FakeQuantize: clamp(round(x / scale), -128, 127) * scale
    # (true divide, half-to-even round -> matches torch.round / torch.clamp semantics)
    q = jnp.clip(jnp.round(h / s), -128.0, 127.0) * s

    # fc2: (TB, 128) @ (128, 10) + bias
    out = jnp.dot(q.astype(cd), w2_ref[...],
                  preferred_element_type=jnp.float32, precision=prec)
    o_ref[...] = (out + b2_ref[...]).astype(o_ref.dtype)


def fcnet_custom_quant(x, w1, b1, w2, b2, act_scale=ACTIVATION_SCALE,
                       tile_b=DEFAULT_TILE_B, compute_dtype=jnp.bfloat16):
    """x: (B, 784). w1: (784, 128), b1: (128,), w2: (128, 10), b2: (10,).

    compute_dtype = MXU input dtype (accumulation is always f32):
      * bfloat16 (default): native MXU dtype; for the full HBM win feed x already in bf16.
      * float32: bit-faithful to the fp32 PyTorch module (precision pinned to HIGHEST).
    """
    B = x.shape[0]
    cd = jnp.dtype(compute_dtype)

    # ---- parameter prep (wrapper-side, once per call) ----
    w1c = w1.astype(cd)
    w2c = w2.astype(cd)
    b1_2d = b1.reshape(1, HIDDEN).astype(jnp.float32)
    b2_2d = b2.reshape(1, OUT_FEATURES).astype(jnp.float32)
    scale_arr = jnp.asarray([act_scale], dtype=jnp.float32)   # SMEM scalar -> no recompiles

    # ---- adaptive batch tiling ----
    align = 16 if jnp.dtype(x.dtype).itemsize < 4 else 8      # (8,128)/(16,128) sublane tiling
    tb, b_pad = _choose_tile(B, tile_b, align)
    if b_pad != B:
        x = jnp.pad(x, ((0, b_pad - B), (0, 0)))
    grid = (b_pad // tb,)

    # ---- VMEM budget: only raise the scoped limit if an oversized tile needs it ----
    lane = lambda n: _round_up(n, 128)
    vmem_est = (2 * tb * lane(IN_FEATURES) * x.dtype.itemsize          # double-buffered x
                + 2 * tb * lane(OUT_FEATURES) * 4                      # double-buffered out
                + 2 * (IN_FEATURES * HIDDEN + HIDDEN * lane(OUT_FEATURES)) * cd.itemsize
                + (1 << 20))
    params = {"dimension_semantics": ("parallel",)}                    # shard tiles across v7x TCs
    if vmem_est > (32 << 20):
        params["vmem_limit_bytes"] = min(vmem_est, 60 << 20)           # stay under v7x 64 MiB

    kernel = functools.partial(_fcnet_kernel, compute_dtype=cd)

    out = pl.pallas_call(
        kernel,
        out_shape=jax.ShapeDtypeStruct((b_pad, OUT_FEATURES), jnp.float32),
        grid_spec=pltpu.PrefetchScalarGridSpec(
            num_scalar_prefetch=0,
            grid=grid,
            in_specs=[
                # activation scale: whole (1,) array in SMEM, read as a scalar in-kernel
                pl.BlockSpec(memory_space=pltpu.MemorySpace.SMEM),
                # x: tiled over batch (pipelined, double-buffered)
                pl.BlockSpec((tb, IN_FEATURES), lambda i: (i, 0)),
                # weights/biases: constant index maps -> fetched once, VMEM-resident
                # TODO(synk): pipeline_mode=pl.Buffered(1) would drop their second buffer
                # (~0.5 MiB); left at the default to keep the kernel maximally portable.
                pl.BlockSpec((IN_FEATURES, HIDDEN), lambda i: (0, 0)),
                pl.BlockSpec((1, HIDDEN), lambda i: (0, 0)),
                pl.BlockSpec((HIDDEN, OUT_FEATURES), lambda i: (0, 0)),
                pl.BlockSpec((1, OUT_FEATURES), lambda i: (0, 0)),
            ],
            # Narrow (tb, 10) store: ~40 B/row of output traffic (hidden under the ~3 KB/row
            # x stream) and no separate (B,128)->(B,10) lane-slice pass afterwards.
            out_specs=pl.BlockSpec((tb, OUT_FEATURES), lambda i: (i, 0)),
        ),
        compiler_params=pltpu.CompilerParams(**params),
    )(scale_arr, x, w1c, b1_2d, w2c, b2_2d)

    return out[:B] if b_pad != B else out


def _reference(x, w1, b1, w2, b2, act_scale=ACTIVATION_SCALE, compute_dtype=jnp.float32):
    """Pure-JAX reference mirroring the kernel's compute dtype."""
    cd = jnp.dtype(compute_dtype)
    prec = (jax.lax.Precision.HIGHEST if cd == jnp.dtype(jnp.float32)
            else jax.lax.Precision.DEFAULT)
    h = jnp.dot(x.astype(cd), w1.astype(cd),
                preferred_element_type=jnp.float32, precision=prec) + b1
    h = jnp.maximum(h, 0.0)
    q = jnp.clip(jnp.round(h / act_scale), -128.0, 127.0) * act_scale
    return jnp.dot(q.astype(cd), w2.astype(cd),
                   preferred_element_type=jnp.float32, precision=prec) + b2


if __name__ == "__main__":
    key = jax.random.PRNGKey(0)
    kx, kw1, kb1, kw2, kb2 = jax.random.split(key, 5)

    batch = 8
    x = jax.random.normal(kx, (batch, IN_FEATURES), dtype=jnp.float32)

    # Deterministic parameter init (uniform, like nn.Linear's default range),
    # stored pre-transposed as (in_features, out_features).
    bound1 = 1.0 / (IN_FEATURES ** 0.5)
    w1 = jax.random.uniform(kw1, (IN_FEATURES, HIDDEN), jnp.float32, -bound1, bound1)
    b1 = jax.random.uniform(kb1, (HIDDEN,), jnp.float32, -bound1, bound1)
    bound2 = 1.0 / (HIDDEN ** 0.5)
    w2 = jax.random.uniform(kw2, (HIDDEN, OUT_FEATURES), jnp.float32, -bound2, bound2)
    b2 = jax.random.uniform(kb2, (OUT_FEATURES,), jnp.float32, -bound2, bound2)

    # 1) Default fast path: bf16 MXU inputs, f32 accumulation (matched-precision reference).
    out = jax.block_until_ready(fcnet_custom_quant(x, w1, b1, w2, b2))
    ref = _reference(x, w1, b1, w2, b2, compute_dtype=jnp.bfloat16)
    assert out.shape == (batch, OUT_FEATURES), out.shape
    assert jnp.allclose(out, ref, atol=2e-3, rtol=2e-3), "mismatch vs bf16 reference"

    # 2) Full-f32 path: bit-faithful to the fp32 PyTorch module (tight tolerance).
    out32 = jax.block_until_ready(
        fcnet_custom_quant(x, w1, b1, w2, b2, compute_dtype=jnp.float32))
    ref32 = _reference(x, w1, b1, w2, b2, compute_dtype=jnp.float32)
    assert out32.shape == (batch, OUT_FEATURES), out32.shape
    assert jnp.allclose(out32, ref32, atol=1e-4, rtol=1e-4), "mismatch vs f32 reference"

    # 3) Non-divisible batch exercising adaptive tiling + a multi-step (even) grid.
    big_b = 1030
    xb = jax.random.normal(kx, (big_b, IN_FEATURES), dtype=jnp.float32)
    out_b = jax.block_until_ready(fcnet_custom_quant(xb, w1, b1, w2, b2, tile_b=256))
    ref_b = _reference(xb, w1, b1, w2, b2, compute_dtype=jnp.bfloat16)
    assert out_b.shape == (big_b, OUT_FEATURES), out_b.shape
    assert jnp.allclose(out_b, ref_b, atol=2e-3, rtol=2e-3), "mismatch vs reference (tiled)"

    print("KERNEL_OK")
</pallas_src>

<mosaic_0001>
module attributes {stable_mosaic.version = 11 : i64} {
  func.func @_fcnet_kernel(%arg0: i32, %arg1: memref<1xf32, #tpu.memory_space<smem>>, %arg2: memref<8x784xf32, #tpu.memory_space<vmem>>, %arg3: memref<784x128xbf16, #tpu.memory_space<vmem>>, %arg4: memref<1x128xf32, #tpu.memory_space<vmem>>, %arg5: memref<128x10xbf16, #tpu.memory_space<vmem>>, %arg6: memref<1x10xf32, #tpu.memory_space<vmem>>, %arg7: memref<8x10xf32, #tpu.memory_space<vmem>>) attributes {dimension_semantics = [#tpu.dimension_semantics<parallel>], iteration_bounds = array<i64: 1>, scalar_prefetch = 0 : i64, scratch_operands = 0 : i64, tpu.core_type = #tpu.core_type<tc>, window_params = [{transform_indices = @transform_0, window_bounds = array<i64: 1>}, {transform_indices = @transform_1, window_bounds = array<i64: 8, 784>}, {pipeline_mode = #tpu.pipeline_mode<synchronous>, transform_indices = @transform_2, window_bounds = array<i64: 784, 128>}, {pipeline_mode = #tpu.pipeline_mode<synchronous>, transform_indices = @transform_3, window_bounds = array<i64: 1, 128>}, {pipeline_mode = #tpu.pipeline_mode<synchronous>, transform_indices = @transform_4, window_bounds = array<i64: 128, 10>}, {pipeline_mode = #tpu.pipeline_mode<synchronous>, transform_indices = @transform_5, window_bounds = array<i64: 1, 10>}, {transform_indices = @transform_6, window_bounds = array<i64: 8, 10>}]} {
    %c0 = arith.constant 0 : index
    %0 = memref.load %arg1[%c0] : memref<1xf32, #tpu.memory_space<smem>>
    %c0_0 = arith.constant 0 : index
    %c0_1 = arith.constant 0 : index
    %1 = vector.load %arg2[%c0_0, %c0_1] : memref<8x784xf32, #tpu.memory_space<vmem>>, vector<8x784xf32>
    %2 = arith.truncf %1 : vector<8x784xf32> to vector<8x784xbf16>
    %c0_2 = arith.constant 0 : index
    %c0_3 = arith.constant 0 : index
    %3 = vector.load %arg3[%c0_2, %c0_3] : memref<784x128xbf16, #tpu.memory_space<vmem>>, vector<784x128xbf16>
    %cst = arith.constant dense<0.000000e+00> : vector<8x128xf32>
    %4 = tpu.matmul %2, %3, %cst {dimension_numbers = #tpu.dot_dimension_numbers<[1], [0], [0], [1], [0, 0, 1, 1], [], []>} : vector<8x784xbf16>, vector<784x128xbf16>, vector<8x128xf32> -> vector<8x128xf32>
    %c0_4 = arith.constant 0 : index
    %c0_5 = arith.constant 0 : index
    %5 = vector.load %arg4[%c0_4, %c0_5] : memref<1x128xf32, #tpu.memory_space<vmem>>, vector<1x128xf32>
    %6 = vector.broadcast %5 : vector<1x128xf32> to vector<8x128xf32>
    %7 = arith.addf %4, %6 : vector<8x128xf32>
    %cst_6 = arith.constant 0.000000e+00 : f32
    %8 = vector.broadcast %cst_6 : f32 to vector<8x128xf32>
    %9 = arith.maximumf %7, %8 : vector<8x128xf32>
    %10 = vector.broadcast %0 : f32 to vector<8x128xf32>
    %11 = arith.divf %9, %10 : vector<8x128xf32>
    %12 = math.roundeven %11 : vector<8x128xf32>
    %cst_7 = arith.constant -1.280000e+02 : f32
    %cst_8 = arith.constant 1.270000e+02 : f32
    %13 = vector.broadcast %cst_7 : f32 to vector<8x128xf32>
    %14 = arith.maximumf %13, %12 : vector<8x128xf32>
    %15 = vector.broadcast %cst_8 : f32 to vector<8x128xf32>
    %16 = arith.minimumf %15, %14 : vector<8x128xf32>
    %17 = vector.broadcast %0 : f32 to vector<8x128xf32>
    %18 = arith.mulf %16, %17 : vector<8x128xf32>
    %19 = arith.truncf %18 : vector<8x128xf32> to vector<8x128xbf16>
    %c0_9 = arith.constant 0 : index
    %c0_10 = arith.constant 0 : index
    %20 = vector.load %arg5[%c0_9, %c0_10] : memref<128x10xbf16, #tpu.memory_space<vmem>>, vector<128x10xbf16>
    %cst_11 = arith.constant dense<0.000000e+00> : vector<8x10xf32>
    %21 = tpu.matmul %19, %20, %cst_11 {dimension_numbers = #tpu.dot_dimension_numbers<[1], [0], [0], [1], [0, 0, 1, 1], [], []>} : vector<8x128xbf16>, vector<128x10xbf16>, vector<8x10xf32> -> vector<8x10xf32>
    %c0_12 = arith.constant 0 : index
    %c0_13 = arith.constant 0 : index
    %22 = vector.load %arg6[%c0_12, %c0_13] : memref<1x10xf32, #tpu.memory_space<vmem>>, vector<1x10xf32>
    %23 = vector.broadcast %22 : vector<1x10xf32> to vector<8x10xf32>
    %24 = arith.addf %21, %23 : vector<8x10xf32>
    %c0_14 = arith.constant 0 : index
    %c0_15 = arith.constant 0 : index
    %25 = vector.load %arg7[%c0_14, %c0_15] : memref<8x10xf32, #tpu.memory_space<vmem>>, vector<8x10xf32>
    tpu.vector_store %arg7[%c0_14, %c0_15], %24 {strides = array<i32>} : memref<8x10xf32, #tpu.memory_space<vmem>>, vector<8x10xf32>,
    return
  }
  func.func @transform_0(%arg0: i32) -> i32 {
    %c0_i32 = arith.constant 0 : i32
    %c0_i32_0 = arith.constant 0 : i32
    return %c0_i32 : i32
  }
  func.func @transform_1(%arg0: i32) -> (i32, i32) {
    %c0_i32 = arith.constant 0 : i32
    %c0_i32_0 = arith.constant 0 : i32
    return %arg0, %c0_i32 : i32, i32
  }
  func.func @transform_2(%arg0: i32) -> (i32, i32) {
    %c0_i32 = arith.constant 0 : i32
    %c0_i32_0 = arith.constant 0 : i32
    %c0_i32_1 = arith.constant 0 : i32
    return %c0_i32, %c0_i32_0 : i32, i32
  }
  func.func @transform_3(%arg0: i32) -> (i32, i32) {
    %c0_i32 = arith.constant 0 : i32
    %c0_i32_0 = arith.constant 0 : i32
    %c0_i32_1 = arith.constant 0 : i32
    return %c0_i32, %c0_i32_0 : i32, i32
  }
  func.func @transform_4(%arg0: i32) -> (i32, i32) {
    %c0_i32 = arith.constant 0 : i32
    %c0_i32_0 = arith.constant 0 : i32
    %c0_i32_1 = arith.constant 0 : i32
    return %c0_i32, %c0_i32_0 : i32, i32
  }
  func.func @transform_5(%arg0: i32) -> (i32, i32) {
    %c0_i32 = arith.constant 0 : i32
    %c0_i32_0 = arith.constant 0 : i32
    %c0_i32_1 = arith.constant 0 : i32
    return %c0_i32, %c0_i32_0 : i32, i32
  }
  func.func @transform_6(%arg0: i32) -> (i32, i32) {
    %c0_i32 = arith.constant 0 : i32
    %c0_i32_0 = arith.constant 0 : i32
    return %arg0, %c0_i32 : i32, i32
  }
}

</mosaic_0001>

<bundles_post_ra>
// kernel: tpu_custom_call.1
= control target key start
LH: loop header
LB: loop body
LE: loop exit
PB: predicated region body
PF: predicated region fallthrough
CT: control target
= control target key end

     0   :  { %12 = vsyncpa [#allocation4], 0  ;;  %s1149_s0 = inlined_call_operand.<no memory space> [shape: f32[1], index: 0, kind: input, shape index: {}]   ;;  %s1150_s1 = inlined_call_operand.vmem [shape: f32[8,784], index: 1, kind: input, shape index: {}]   ;;  %s1151_s2 = inlined_call_operand.hbm [shape: bf16[784,128], index: 2, kind: input, shape index: {}]   ;;  %s1152_s3 = inlined_call_operand.vmem [shape: f32[1,128], index: 3, kind: input, shape index: {}]   ;;  %s1153_s4 = inlined_call_operand.vmem [shape: bf16[128,10], index: 4, kind: input, shape index: {}]   ;;  %s1154_s5 = inlined_call_operand.vmem [shape: f32[1,10], index: 5, kind: input, shape index: {}]   ;;  %s1155_s6 = inlined_call_operand.hbm [shape: f32[8,10], index: 6, kind: output, shape index: {}]  }
   0x1   :  { %13 = vsyncpa [#allocation5], 0  ;;  %s1035_s21 = smov [#allocation3]  }
   0x2   :  { %s23_s22 = sshll.u32 %s1035_s21, 4  ;;  %s24_s22 = int_to_ptr.vmem [resolvable:$true] %s23_s22 }
   0x3   :  { %s999_s23 = scalar_lea.vmem %s24_s22, 6272  ;;  %p1004_p1 = scmp.lt.s32.totalorder %s24_s22, %s24_s22 }
   0x4   :  { %p1000_p0 = scmp.ne.s32.totalorder %s24_s22, %s999_s23  ;;  %p1005_p2 = scmp.lt.s32.totalorder %s999_s23, %s999_s23 }
   0x6   :  { %p1006_p3 = por %p1005_p2, %p1004_p1 }
   0x8   :  { %p1007_p4 = pnand %p1006_p3, %p1000_p0 }
   0xa   :  { %1010 = shalt.err (!%p1007_p4)
}
   0xb   :  { %s1036_s24 = smov 64   ;;  %s1037_s25 = smov 4  }
   0xc   :  { %29 = dma.hbm_to_vmem [thread:$0]  %s1151_s2, 6272, %s24_s22, [#allocation4], %s1036_s24, %s1036_s24, %s1037_s25  }
   0xd   :  { %1031 = dma.done.wait [#allocation4], 6272  }
   0xe   :  { %1032 = vsyncadd [#allocation4], 4294961024  ;;  %v932_v0 = vld [vmem:[#allocation3 + $0x78] sm:$0xff]   ;;  %v936_v4 = vld [vmem:[#allocation3 + $0x70] sm:$0xff]   ;;  %v1038_v44 = vmov 0.0   ;;  %vm1039_vm0 = vmmov 0  }
   0xf   :  { %v933_v1 = vld [vmem:[#allocation3 + $0x38] sm:$0xff]   ;;  %815 = vmatprep.subr.bf16.mxu0 %v932_v0  ;;  %v937_v5 = vld [vmem:[#allocation3 + $0x30] sm:$0xff]   ;;  %v940_v8 = vld [vmem:[#allocation3 + $0x68] sm:$0xff]   ;;  %vm454_vm1 = vcmask 130048   ;;  %s1040_s10 = smov [#allocation6]   ;;  %vm738_vm3 = vcmask 80896  }
  0x10   :  { %v934_v2 = vld [vmem:[#allocation3 + $0xf8] sm:$0xff]   ;;  %816 = vmatpush3.bf16.msra.mxu0 %v933_v1  ;;  %v938_v6 = vld [vmem:[#allocation3 + $0xf0] sm:$0xff]   ;;  %v941_v9 = vld [vmem:[#allocation3 + $0x28] sm:$0xff]   ;;  %s746_s11 = sshll.u32 %s1040_s10, 4  ;;  %s747_s11 = int_to_ptr.vmem [resolvable:$true] %s746_s11 }
  0x11   :  { %v935_v3 = vld [vmem:[#allocation3 + $0xb8] sm:$0xff]   ;;  %837 = vmatprep.subr.bf16.mxu1 %v934_v2  ;;  %817 = vmatprep.subr.bf16.mxu0 %v936_v4  ;;  %v939_v7 = vld [vmem:[#allocation3 + $0xb0] sm:$0xff]   ;;  %v942_v10 = vld [vmem:[#allocation3 + $0xe8] sm:$0xff]   ;;  %s1011_s12 = scalar_lea.vmem %s747_s11, 128  ;;  %p1016_p6 = scmp.lt.s32.totalorder %s747_s11, %s747_s11 }
  0x12   :  { %838 = vmatpush3.bf16.msra.mxu1 %v935_v3  ;;  %v943_v11 = vld [vmem:[#allocation3 + $0xa8] sm:$0xff]   ;;  %v944_v12 = vld [vmem:[#allocation3 + $0x60] sm:$0xff]   ;;  %v948_v16 = vld [vmem:[#allocation3 + $0x58] sm:$0xff]   ;;  %p1012_p5 = scmp.ne.s32.totalorder %s747_s11, %s1011_s12  ;;  %p1017_p7 = scmp.lt.s32.totalorder %s1011_s12, %s1011_s12 }
  0x13   :  { %839 = vmatprep.subr.bf16.mxu1 %v938_v6  ;;  %v945_v13 = vld [vmem:[#allocation3 + $0x20] sm:$0xff]   ;;  %v949_v17 = vld [vmem:[#allocation3 + $0x18] sm:$0xff]   ;;  %v952_v20 = vld [vmem:[#allocation3 + $0x50] sm:$0xff]  }
  0x14   :  { %818 = vmatpush3.bf16.msra.mxu0 %v937_v5  ;;  %v946_v14 = vld [vmem:[#allocation3 + $0xe0] sm:$0xff]   ;;  %v950_v18 = vld [vmem:[#allocation3 + $0xd8] sm:$0xff]   ;;  %v953_v21 = vld [vmem:[#allocation3 + $0x10] sm:$0xff]   ;;  %p1018_p8 = por %p1017_p7, %p1016_p6 }
  0x15   :  { %819 = vmatprep.subr.bf16.mxu0 %v940_v8  ;;  %v947_v15 = vld [vmem:[#allocation3 + $0xa0] sm:$0xff]   ;;  %v951_v19 = vld [vmem:[#allocation3 + $0x98] sm:$0xff]   ;;  %v954_v22 = vld [vmem:[#allocation3 + $0xd0] sm:$0xff]  }
  0x16   :  { %840 = vmatpush3.bf16.msra.mxu1 %v939_v7  ;;  %v955_v23 = vld [vmem:[#allocation3 + $0x90] sm:$0xff]   ;;  %v956_v24 = vld [vmem:[#allocation3 + $0x48] sm:$0xff]   ;;  %v960_v28 = vld [vmem:[#allocation3 + $0x40] sm:$0xff]   ;;  %p1019_p9 = pnand %p1018_p8, %p1012_p5 }
  0x17   :  { %841 = vmatprep.subr.bf16.mxu1 %v942_v10  ;;  %v957_v25 = vld [vmem:[#allocation3 + $0x8] sm:$0xff]   ;;  %v961_v29 = vld [vmem:[#allocation3] sm:$0xff]   ;;  %v964_v36 = vld [vmem:[#allocation3 + $0x178] sm:$0xff]  }
  0x18   :  { %820 = vmatpush3.bf16.msra.mxu0 %v941_v9  ;;  %v958_v26 = vld [vmem:[#allocation3 + $0xc8] sm:$0xff]   ;;  %v962_v30 = vld [vmem:[#allocation3 + $0xc0] sm:$0xff]   ;;  %v44_v37 = vld [vmem:[%s1150_s1 + $0x18] sm:$0xff] }
  0x19   :  { %821 = vmatprep.subr.bf16.mxu0 %v944_v12  ;;  %v959_v27 = vld [vmem:[#allocation3 + $0x88] sm:$0xff]   ;;  %v963_v33 = vld [vmem:[#allocation3 + $0x80] sm:$0xff]   ;;  %v51_v38 = vpack.c.bf16 %v44_v37, %v44_v37  ;;  %v965_v39 = vld [vmem:[#allocation3 + $0x138] sm:$0xff]  }
  0x1a   :  { %842 = vmatpush3.bf16.msra.mxu1 %v943_v11  ;;  %v42_v31 = vld [vmem:[%s1150_s1 + $0x8] sm:$0xff]  ;;  %v41_v34 = vld [vmem:[%s1150_s1] sm:$0xff]  ;;  %v43_v40 = vld [vmem:[%s1150_s1 + $0x10] sm:$0xff] }
  0x1b   :  { %843 = vmatprep.subr.bf16.mxu1 %v946_v14  ;;  %v49_v32 = vpack.c.bf16 %v42_v31, %v42_v31  ;;  %v48_v35 = vpack.c.bf16 %v41_v34, %v41_v34  ;;  %530 = vmatprep.mubr.bf16.mxu1 %v51_v38  ;;  %v50_v41 = vpack.c.bf16 %v43_v40, %v43_v40  ;;  %v966_v42 = vld [vmem:[#allocation3 + $0x170] sm:$0xff]   ;;  %v968_v45 = vld [vmem:[#allocation3 + $0x168] sm:$0xff]   ;;  %v970_v47 = vld [vmem:[#allocation3 + $0x160] sm:$0xff]  }
  0x1c   :  { %822 = vmatpush3.bf16.msra.mxu0 %v945_v13  ;;  %v967_v43 = vld [vmem:[#allocation3 + $0x130] sm:$0xff]   ;;  %v969_v46 = vld [vmem:[#allocation3 + $0x128] sm:$0xff]   ;;  %v971_v48 = vld [vmem:[#allocation3 + $0x120] sm:$0xff]  }
  0x1d   :  { %823 = vmatprep.subr.bf16.mxu0 %v948_v16  ;;  %490 = vmatprep.mubr.bf16.mxu0 %v49_v32  ;;  %v972_v49 = vld [vmem:[#allocation3 + $0x158] sm:$0xff]   ;;  %v974_v51 = vld [vmem:[#allocation3 + $0x150] sm:$0xff]   ;;  %v980_v53 = vld [vmem:[#allocation3 + $0x180] sm:$0xff]  }
  0x1e   :  { %844 = vmatpush3.bf16.msra.mxu1 %v947_v15  ;;  %v973_v50 = vld [vmem:[#allocation3 + $0x118] sm:$0xff]   ;;  %v975_v52 = vld [vmem:[#allocation3 + $0x110] sm:$0xff]   ;;  %v46_v54 = vld [vmem:[%s1150_s1 + $0x28] sm:$0xff] }
  0x1f   :  { %845 = vmatprep.subr.bf16.mxu1 %v950_v18  ;;  %v976_v55 = vld [vmem:[#allocation3 + $0x148] sm:$0xff]   ;;  %v53_v56 = vpack.c.bf16 %v46_v54, %v46_v54  ;;  %v47_v57 = vld [vmem:[%s1150_s1 + $0x30] sm:$0xff]  ;;  %v978_v60 = vld [vmem:[#allocation3 + $0x140] sm:$0xff]   ;;  %v619_v18 = vstv %s1149_s0 }
  0x20   :  { %824 = vmatpush3.bf16.msra.mxu0 %v949_v17  ;;  %v54_v58 = vpack.c.bf16 %v47_v57, %v47_v57  ;;  %v977_v59 = vld [vmem:[#allocation3 + $0x108] sm:$0xff]   ;;  %v979_v61 = vld [vmem:[#allocation3 + $0x100] sm:$0xff]   ;;  %v981_v0 = vld [vmem:[%s1153_s4 + $0x38] sm:$0xff]   ;;  %989 = vrcp.f32 %v619_v18 }
  0x21   :  { %825 = vmatprep.subr.bf16.mxu0 %v952_v20  ;;  %v45_v62 = vld [vmem:[%s1150_s1 + $0x20] sm:$0xff]  ;;  %v982_v1 = vld [vmem:[%s1153_s4 + $0x30] sm:$0xff]   ;;  %v983_v2 = vld [vmem:[%s1153_s4 + $0x28] sm:$0xff]  }
  0x22   :  { %846 = vmatpush3.bf16.msra.mxu1 %v951_v19  ;;  %v52_v63 = vpack.c.bf16 %v45_v62, %v45_v62  ;;  %v984_v3 = vld [vmem:[%s1153_s4 + $0x20] sm:$0xff]   ;;  %v985_v4 = vld [vmem:[%s1153_s4 + $0x18] sm:$0xff]   ;;  %v986_v5 = vld [vmem:[%s1153_s4 + $0x10] sm:$0xff]  }
  0x23   :  { %847 = vmatprep.subr.bf16.mxu1 %v954_v22  ;;  %v987_v6 = vld [vmem:[%s1153_s4 + $0x8] sm:$0xff]   ;;  %v988_v7 = vld [vmem:[%s1153_s4] sm:$0xff]  }
  0x24   :  { %826 = vmatpush3.bf16.msra.mxu0 %v953_v21  ;;  %v755_v22 = vld [vmem:[%s1152_s3] ss:$0 sm:$0xff] }
  0x25   :  { %827 = vmatprep.subr.bf16.mxu0 %v956_v24 }
  0x26   :  { %848 = vmatpush3.bf16.msra.mxu1 %v955_v23 }
  0x27   :  { %849 = vmatprep.subr.bf16.mxu1 %v958_v26 }
  0x28   :  { %828 = vmatpush3.bf16.msra.mxu0 %v957_v25 }
  0x29   :  { %829 = vmatprep.subr.bf16.mxu0 %v960_v28 }
  0x2a   :  { %850 = vmatpush3.bf16.msra.mxu1 %v959_v27 }
  0x2b   :  { %851 = vmatprep.subr.bf16.mxu1 %v962_v30 }
  0x2c   :  { %830 = vmatpush3.bf16.msra.mxu0 %v961_v29 }
  0x2d   :  { %859 = vmatprep.subr.bf16.mxu0 %v964_v36 }
  0x2e   :  { %852 = vmatpush3.bf16.msra.mxu1 %v963_v33  ;;  %v990_v33 = vpop.eup %989 }
  0x2f   :  { %491 = vmatmul.mubr.bf16.vlgmr.msra.gmra.mxu0 %v48_v35  ;;  %892 = vmatprep.subr.bf16.mxu1 %v1038_v44 }
  0x30   :  { %860 = vmatpush3.bf16.msra.mxu0 %v965_v39  ;;  %570 = vmatprep.mubr.bf16.mxu0 %v53_v56 }
  0x31   :  { %531 = vmatmul.mubr.bf16.vlgmr.msra.gmra.mxu1 %v50_v41  ;;  %861 = vmatprep.subr.bf16.mxu0 %v966_v42 }
  0x32   :  { %894 = vmatprep.mubr.msk.bf16.mxu1 %vm1039_vm0, %v1038_v44  ;;  %893 = vmatpush3.bf16.msra.mxu1 %v980_v53 }
  0x33   :  { %898 = vmatprep.subr.bf16.mxu1 %v1038_v44 }
  0x34   :  { %862 = vmatpush3.bf16.msra.mxu0 %v967_v43 }
  0x35   :  { %863 = vmatprep.subr.bf16.mxu0 %v968_v45 }
  0x38   :  { %864 = vmatpush3.bf16.msra.mxu0 %v969_v46 }
  0x39   :  { %865 = vmatprep.subr.bf16.mxu0 %v970_v47  ;;  %895 = vmatmul.mubr.msk.bf16.vlgmr.msra.gmra.mxu1 %vm454_vm1, %v54_v58  ;;  %v806_v47 = vld [vmem:[%s1154_s5] ss:$0 sm:$0xff] }
  0x3a   :  { %914 = vmatprep.mubr.msk.bf16.mxu1 %vm1039_vm0, %v1038_v44  ;;  %899 = vmatpush3.bf16.msra.mxu1 %v981_v0 }
  0x3b   :  { %900 = vmatprep.subr.bf16.mxu1 %v1038_v44 }
  0x3c   :  { %866 = vmatpush3.bf16.msra.mxu0 %v971_v48 }
  0x3d   :  { %867 = vmatprep.subr.bf16.mxu0 %v972_v49 }
  0x3e   :  { %901 = vmatpush3.bf16.msra.mxu1 %v982_v1 }
  0x3f   :  { %902 = vmatprep.subr.bf16.mxu1 %v1038_v44 }
  0x40   :  { %868 = vmatpush3.bf16.msra.mxu0 %v973_v50 }
  0x41   :  { %869 = vmatprep.subr.bf16.mxu0 %v974_v51 }
  0x42   :  { %903 = vmatpush3.bf16.msra.mxu1 %v983_v2 }
  0x43   :  { %904 = vmatprep.subr.bf16.mxu1 %v1038_v44 }
  0x44   :  { %870 = vmatpush3.bf16.msra.mxu0 %v975_v52 }
  0x45   :  { %871 = vmatprep.subr.bf16.mxu0 %v976_v55 }
  0x46   :  { %905 = vmatpush3.bf16.msra.mxu1 %v984_v3 }
  0x47   :  { %906 = vmatprep.subr.bf16.mxu1 %v1038_v44 }
  0x48   :  { %872 = vmatpush3.bf16.msra.mxu0 %v977_v59 }
  0x49   :  { %873 = vmatprep.subr.bf16.mxu0 %v978_v60 }
  0x4a   :  { %907 = vmatpush3.bf16.msra.mxu1 %v985_v4 }
  0x4b   :  { %908 = vmatprep.subr.bf16.mxu1 %v1038_v44 }
  0x4c   :  { %874 = vmatpush3.bf16.msra.mxu0 %v979_v61 }
  0x4e   :  { %909 = vmatpush3.bf16.msra.mxu1 %v986_v5 }
  0x4f   :  { %571 = vmatmul.mubr.bf16.vlgmr.msra.gmra.mxu0 %v52_v63  ;;  %910 = vmatprep.subr.bf16.mxu1 %v1038_v44 }
  0x52   :  { %911 = vmatpush3.bf16.msra.mxu1 %v987_v6 }
  0x53   :  { %912 = vmatprep.subr.bf16.mxu1 %v1038_v44 }
  0x56   :  { %913 = vmatpush3.bf16.msra.mxu1 %v988_v7 }
  0xef   :  { %v831_v8 = vpop.f32.mrf.mxu0 }
  0xf1   :  { %v832_v9 = vpop.f32.mrf.mxu0  ;;  %v853_v10 = vpop.f32.mrf.mxu1 }
  0xf2   :  { %v833_v21 = vadd.f32 %v832_v9, %v831_v8 }
  0xf3   :  { %v834_v11 = vpop.f32.mrf.mxu0  ;;  %v854_v12 = vpop.f32.mrf.mxu1 }
  0xf4   :  { %v493_v23 = vadd.f32 %v833_v21, %v755_v22  ;;  %v855_v24 = vadd.f32 %v854_v12, %v853_v10 }
  0xf5   :  { %v835_v13 = vpop.f32.mrf.mxu0  ;;  %v856_v14 = vpop.f32.mrf.mxu1 }
  0xf6   :  { %v533_v27 = vadd.f32 %v855_v24, %v493_v23 }
  0xf7   :  { %v857_v15 = vpop.f32.mrf.mxu1 }
  0xf9   :  { %v612_v16 = vpop.f32.mrf.mxu1 }
  0xfb   :  { %v896_v17 = vpop.f32.mrf.mxu1 }
  0xfd   :  { %v615_v19 = vpop.f32.mrf.mxu1 }
  0xff   :  { %v897_v20 = vpop.f32.mrf.mxu1 }
 0x10f   :  { %v875_v25 = vpop.f32.mrf.mxu0 }
 0x111   :  { %v876_v26 = vpop.f32.mrf.mxu0 }
 0x112   :  { %v877_v28 = vadd.f32 %v876_v26, %v875_v25 }
 0x113   :  { %v878_v29 = vpop.f32.mrf.mxu0 }
 0x114   :  { %v573_v30 = vadd.f32 %v877_v28, %v533_v27 }
 0x115   :  { %v879_v31 = vpop.f32.mrf.mxu0 }
 0x116   :  { %v613_v32 = vadd.f32 %v612_v16, %v573_v30 }
 0x118   :  { %v618_v34 = vmax.f32 %v613_v32, 0.0 }
 0x11a   :  { %v621_v35 = vmul.f32 %v990_v33, %v618_v34 }
 0x11c   :  { %v920_v36 = vcvt.f32.s32 %v621_v35  ;;  %v918_v38 = vand.u32 2147483647, %v621_v35  ;;  %v923_v40 = vand.u32 2147483648, %v621_v35 }
 0x11e   :  { %v921_v37 = vcvt.s32.f32 %v920_v36  ;;  %vm919_vm2 = vcmp.lt.f32.partialorder %v918_v38, 8388608.0 }
 0x120   :  { %v922_v39 = vand.u32 2147483647, %v921_v37 }
 0x122   :  { %v924_v41 = vor.u32 %v923_v40, %v922_v39 }
 0x124   :  { %v925_v42 = vsel %vm919_vm2, %v924_v41, %v621_v35 }
 0x125   :  { %v623_v43 = vmax.f32 %v925_v42, -128.0 }
 0x127   :  { %v624_v44 = vmin.f32 %v623_v43, 127.0 }
 0x129   :  { %v625_v45 = vmul.f32 %v624_v44, %v619_v18 }
 0x12b   :  { %v626_v46 = vpack.c.bf16 %v625_v45, %v625_v45 }
 0x12d   :  { %915 = vmatmul.mubr.bf16.vlgmr.msra.gmra.mxu1 %v626_v46 }
 0x1ed   :  { %v732_v48 = vpop.f32.mrf.mxu1 }
 0x1ee   :  { %v733_v49 = vadd.f32 %v806_v47, %v732_v48 }
 0x1ef   :  { %v916_v50 = vpop.f32.mrf.mxu1 }
 0x1f0   :  { %739 = vst.msk [vmem:[#allocation6] sm:$0xff] %vm738_vm3, %v733_v49 }
 0x1f1   :  { %v735_v51 = vpop.f32.mrf.mxu1 }
 0x1f2   :  { %1022 = shalt.err (!%p1019_p9)
}
 0x1f3   :  { %749 = dma.vmem_to_hbm [thread:$0]  %s747_s11, 128, %s1155_s6, [#allocation5]   ;;  %v917_v52 = vpop.f32.mrf.mxu1 }
 0x1f4   :  { %1033 = dma.done.wait [#allocation5], 128  }
 0x1f5   :  { %1034 = vsyncadd [#allocation5], 4294967168 }
 0x1f6   :  { %753 = vsyncpa [#allocation4], 1 }
 0x1f7   :  { %754 = vsyncpa [#allocation5], 1 }

</bundles_post_ra>
